<compile_context>
chip_gen: v6e
topology: v6e:2x2x1
jax: 0.10.0
libtpu: 0.0.40
codegen_flags: <defaults>
</compile_context>

<pallas_src>
import functools

import jax
import jax.numpy as jnp
import numpy as np
from jax import lax
from jax.experimental import pallas as pl
from jax.experimental.pallas import tpu as pltpu


def _ntxent_kernel(zi_hbm, zj_hbm, loss_ref, si_ref, sj_ref, pn_ref, rn_ref,
                   *, temperature, batch_size, row_tile):
    # zi_hbm, zj_hbm : (B, D) f32 refs left in HBM (memory_space=pl.ANY).
    # loss_ref       : (TM, 1) per-row loss for this row tile.
    # si/sj_ref      : (B, D) f32 staging buffers for the one-time DMA.
    # pn_ref         : (B, D) f32 positive partners of the first-half rows.
    # rn_ref         : (2B, D) normalized rows scaled by 1/sqrt(T) (mm dtype).
    b = batch_size
    n = 2 * b
    tm = row_tile
    inv_t = jnp.float32(1.0 / temperature)
    half = pl.program_id(0)            # 0 -> rows [0, B), 1 -> rows [B, 2B)
    step = pl.program_id(1)            # row tile within the half

    @pl.when(step == 0)
    def _init():
        # Build the scratch once per core.  Rebuilding is idempotent, so it is
        # also correct when one core runs both outer indices (v5e/v6e).
        def norm_scale(x):
            # torch F.normalize(dim=1, eps=1e-12) with 1/sqrt(T) folded in via
            # one rsqrt, so the MXU emits logits == sim / T directly.
            x = x.astype(jnp.float32)
            sq = jnp.sum(x * x, axis=1, keepdims=True)
            return x * lax.rsqrt(jnp.maximum(sq, jnp.float32(1e-24))
                                 * jnp.float32(temperature))

        pltpu.sync_copy(zi_hbm, si_ref)          # HBM -> VMEM, once per core
        pltpu.sync_copy(zj_hbm, sj_ref)

        zi_n = norm_scale(si_ref[...])                        # (B, D) f32
        rn_ref[0:b, :] = zi_n.astype(rn_ref.dtype)
        # Positive partner of global row i < B is R[i + 1]:
        #   zi_n[i+1] for i < B-1, zj_n[0] for i == B-1  (matches the torch
        #   module's label convention on the diagonal-masked matrix).
        pn_ref[0:b - 1, :] = zi_n[1:b, :]

        zj_n = norm_scale(sj_ref[...])                        # (B, D) f32
        rn_ref[b:n, :] = zj_n.astype(rn_ref.dtype)
        pn_ref[b - 1:b, :] = zj_n[0:1, :]

    roff = pl.multiple_of(step * tm, 8)          # row offset within the half
    s = pl.multiple_of(half * b + roff, 8)       # global row offset

    lhs = rn_ref[pl.ds(s, tm), :]                             # (TM, D)
    # MXU: logits strip = (R/sqrt(T)) @ (R/sqrt(T)).T == sim / T.
    logits = lax.dot_general(
        lhs, rn_ref[...],
        dimension_numbers=(((1,), (1,)), ((), ())),
        preferred_element_type=jnp.float32)                   # (TM, 2B) f32

    # Logsumexp over the off-diagonal columns with the constant shift 1/T
    # (every logit <= 1/T up to matmul rounding, so exp never overflows).
    # The diagonal is excluded by masking before the sum — no cancellation.
    col_ids = lax.broadcasted_iota(jnp.int32, (tm, n), 1)
    row_ids = s + lax.broadcasted_iota(jnp.int32, (tm, n), 0)
    p = jnp.where(col_ids == row_ids, 0.0, jnp.exp(logits - inv_t))
    lse = jnp.log(jnp.sum(p, axis=1, keepdims=True)) + inv_t  # (TM, 1)

    # Target logit per row: O(TM*D) dot with the positive-partner rows (1/T is
    # already folded into both operands).  Aligned slices only: first half ->
    # pn rows, second half -> rn[0:B] rows.
    lhs_f32 = lhs.astype(jnp.float32)
    partner = jnp.where(half == 0,
                        pn_ref[pl.ds(roff, tm), :],
                        rn_ref[pl.ds(roff, tm), :].astype(jnp.float32))
    target = jnp.sum(lhs_f32 * partner, axis=1, keepdims=True)  # (TM, 1)

    # CrossEntropy per row: lse_i - logit_i[label_i]; mean is done in JAX.
    loss_ref[...] = lse - target


_TILE_CANDIDATES = (512, 256, 128, 64, 32, 16, 8)


def _vmem_footprint(b, d, tm, mm_bytes):
    n = 2 * b
    dp = max(d, 128)                        # minor dim pads to lane width
    resident = n * dp * mm_bytes            # rn
    resident += 2 * b * dp * 4              # z_i / z_j staging
    resident += b * dp * 4                  # first-half positive partners
    resident += 2 * tm * 128 * 4            # (tm, 1) out block, 2 bufs, padded
    strip = 4 * tm * n * 4                  # logits + exp/mask temporaries
    init = b * dp * 4                       # normalized-half transient at init
    return resident + strip + init + (2 << 20)


def ntxent_loss_pallas(z_i, z_j, temperature=0.5, matmul_dtype=jnp.bfloat16):
    z_i = jnp.asarray(z_i, jnp.float32)
    z_j = jnp.asarray(z_j, jnp.float32)
    assert z_i.ndim == 2 and z_i.shape == z_j.shape
    b, d = z_i.shape
    n = 2 * b
    # TODO(synk): pad + mask support for batch sizes that are not multiples of 8.
    assert b % 8 == 0, "batch size must be a multiple of 8 for this kernel"

    mm_dtype = jnp.dtype(matmul_dtype)
    mm_bytes = mm_dtype.itemsize

    try:   # physical VMEM: 128 MiB on v5e/v6e, 64 MiB per TensorCore on v7x.
        vmem_phys = int(pltpu.get_tpu_info().vmem_capacity_bytes)
    except Exception:  # conservative fallback
        vmem_phys = 64 * 1024 * 1024
    budget = int(vmem_phys * 0.85)          # leave compiler/scheduler headroom

    tm = 0
    for cand in _TILE_CANDIDATES:
        if b % cand == 0 and _vmem_footprint(b, d, cand, mm_bytes) <= budget:
            tm = cand
            break
    # TODO(synk): column-block the 2B axis instead of failing for huge batches.
    assert tm > 0, "no row tile fits VMEM; batch too large for this kernel"

    vmem_limit = max(32 * 1024 * 1024,
                     min(budget, _vmem_footprint(b, d, tm, mm_bytes) + (8 << 20)))

    kernel = functools.partial(
        _ntxent_kernel, temperature=float(temperature), batch_size=b,
        row_tile=tm)

    n_inner = b // tm
    per_row = pl.pallas_call(
        kernel,
        out_shape=jax.ShapeDtypeStruct((n, 1), jnp.float32),
        grid_spec=pltpu.PrefetchScalarGridSpec(
            num_scalar_prefetch=0,
            grid=(2, n_inner),                      # (half, row tile in half)
            in_specs=[
                pl.BlockSpec(memory_space=pl.ANY),  # z_i stays in HBM
                pl.BlockSpec(memory_space=pl.ANY),  # z_j stays in HBM
            ],
            out_specs=pl.BlockSpec((tm, 1), lambda h, i: (h * n_inner + i, 0)),
            scratch_shapes=[
                pltpu.VMEM((b, d), jnp.float32),    # z_i staging
                pltpu.VMEM((b, d), jnp.float32),    # z_j staging
                pltpu.VMEM((b, d), jnp.float32),    # first-half partners
                pltpu.VMEM((n, d), mm_dtype),       # normalized rows / sqrt(T)
            ],
        ),
        compiler_params=pltpu.CompilerParams(
            dimension_semantics=("parallel", "arbitrary"),
            vmem_limit_bytes=int(vmem_limit),
        ),
    )(z_i, z_j)

    # Tiny final mean in JAX; multiply by a precomputed 1/n (no vector divide).
    return jnp.sum(per_row) * jnp.float32(1.0 / n)


def ntxent_loss_ref(z_i, z_j, temperature=0.5):
    """Pure-numpy reference replicating the PyTorch module exactly."""
    z_i = np.asarray(z_i, np.float32)
    z_j = np.asarray(z_j, np.float32)
    b = z_i.shape[0]
    zi = z_i / np.maximum(np.linalg.norm(z_i, axis=1, keepdims=True), 1e-12)
    zj = z_j / np.maximum(np.linalg.norm(z_j, axis=1, keepdims=True), 1e-12)
    r = np.concatenate([zi, zj], axis=0)
    sim = r @ r.T
    n = 2 * b
    mask = ~np.eye(n, dtype=bool)
    logits = sim[mask].reshape(n, n - 1) / temperature
    labels = np.concatenate([np.arange(b), np.arange(b)])
    row_max = logits.max(axis=1, keepdims=True)
    lse = np.log(np.exp(logits - row_max).sum(axis=1)) + row_max[:, 0]
    target = logits[np.arange(n), labels]
    return np.mean(lse - target)


if __name__ == "__main__":
    key = jax.random.PRNGKey(0)
    k1, k2 = jax.random.split(key)
    B, D = 8, 32
    z_i = jax.random.normal(k1, (B, D), dtype=jnp.float32)
    z_j = jax.random.normal(k2, (B, D), dtype=jnp.float32)
    ref = ntxent_loss_ref(np.array(z_i), np.array(z_j), temperature=0.5)

    # Default path: bf16 MXU operands (f32 accumulation) -> ~1e-3 logit error.
    loss_bf16 = jax.block_until_ready(
        ntxent_loss_pallas(z_i, z_j, temperature=0.5))
    np.testing.assert_allclose(np.array(loss_bf16), ref, rtol=3e-2, atol=3e-2)

    # Exact-parity path: full f32 matmul.
    loss_f32 = jax.block_until_ready(
        ntxent_loss_pallas(z_i, z_j, temperature=0.5,
                           matmul_dtype=jnp.float32))
    np.testing.assert_allclose(np.array(loss_f32), ref, rtol=1e-5, atol=1e-5)

    print("KERNEL_OK")
</pallas_src>

<mosaic_0001>
module attributes {stable_mosaic.version = 11 : i64} {
  func.func @_ntxent_kernel(%arg0: i32, %arg1: i32, %arg2: memref<8x32xf32, #tpu.memory_space<any>>, %arg3: memref<8x32xf32, #tpu.memory_space<any>>, %arg4: memref<8x1xf32, #tpu.memory_space<vmem>>, %arg5: memref<8x32xf32, #tpu.memory_space<vmem>>, %arg6: memref<8x32xf32, #tpu.memory_space<vmem>>, %arg7: memref<8x32xf32, #tpu.memory_space<vmem>>, %arg8: memref<16x32xbf16, #tpu.memory_space<vmem>>) attributes {dimension_semantics = [#tpu.dimension_semantics<parallel>, #tpu.dimension_semantics<arbitrary>], iteration_bounds = array<i64: 2, 1>, scalar_prefetch = 0 : i64, scratch_operands = 4 : i64, tpu.core_type = #tpu.core_type<tc>, window_params = [{}, {}, {transform_indices = @transform_2, window_bounds = array<i64: 8, 1>}]} {
    %c0_i32 = arith.constant 0 : i32
    %0 = arith.cmpi eq, %arg1, %c0_i32 : i32
    %1 = arith.extui %0 : i1 to i32
    %c0_i32_0 = arith.constant 0 : i32
    %2 = arith.cmpi ne, %1, %c0_i32_0 : i32
    scf.if %2 {
      "tpu.region"() ({
        %70 = tpu.sem_alloc : memref<!tpu.dma_semaphore, #tpu.memory_space<semaphore_mem>>
        tpu.enqueue_dma source(%arg2 : memref<8x32xf32, #tpu.memory_space<any>>) target(%arg5 : memref<8x32xf32, #tpu.memory_space<vmem>>) target_semaphore(%70 : memref<!tpu.dma_semaphore, #tpu.memory_space<semaphore_mem>>)
        tpu.wait_dma2 semaphore(%70 : memref<!tpu.dma_semaphore, #tpu.memory_space<semaphore_mem>>) src(%arg2 : memref<8x32xf32, #tpu.memory_space<any>>) dst(%arg5 : memref<8x32xf32, #tpu.memory_space<vmem>>)
        tpu.yield
      }) : () -> ()
      "tpu.region"() ({
        %70 = tpu.sem_alloc : memref<!tpu.dma_semaphore, #tpu.memory_space<semaphore_mem>>
        tpu.enqueue_dma source(%arg3 : memref<8x32xf32, #tpu.memory_space<any>>) target(%arg6 : memref<8x32xf32, #tpu.memory_space<vmem>>) target_semaphore(%70 : memref<!tpu.dma_semaphore, #tpu.memory_space<semaphore_mem>>)
        tpu.wait_dma2 semaphore(%70 : memref<!tpu.dma_semaphore, #tpu.memory_space<semaphore_mem>>) src(%arg3 : memref<8x32xf32, #tpu.memory_space<any>>) dst(%arg6 : memref<8x32xf32, #tpu.memory_space<vmem>>)
        tpu.yield
      }) : () -> ()
      %c0_14 = arith.constant 0 : index
      %c0_15 = arith.constant 0 : index
      %40 = vector.load %arg5[%c0_14, %c0_15] : memref<8x32xf32, #tpu.memory_space<vmem>>, vector<8x32xf32>
      %41 = arith.mulf %40, %40 : vector<8x32xf32>
      %cst_16 = arith.constant dense<0.000000e+00> : vector<8xf32>
      %42 = vector.multi_reduction <add>, %41, %cst_16 [1] : vector<8x32xf32> to vector<8xf32>
      %43 = vector.shape_cast %42 : vector<8xf32> to vector<8x1xf32>
      %cst_17 = arith.constant 1.000000e-24 : f32
      %44 = vector.broadcast %cst_17 : f32 to vector<8x1xf32>
      %45 = arith.maximumf %43, %44 : vector<8x1xf32>
      %cst_18 = arith.constant 5.000000e-01 : f32
      %46 = vector.broadcast %cst_18 : f32 to vector<8x1xf32>
      %47 = arith.mulf %45, %46 : vector<8x1xf32>
      %48 = math.rsqrt %47 : vector<8x1xf32>
      %49 = vector.broadcast %48 : vector<8x1xf32> to vector<8x32xf32>
      %50 = arith.mulf %40, %49 : vector<8x32xf32>
      %51 = arith.truncf %50 : vector<8x32xf32> to vector<8x32xbf16>
      %c0_19 = arith.constant 0 : index
      %c0_20 = arith.constant 0 : index
      %52 = vector.load %arg8[%c0_19, %c0_20] : memref<16x32xbf16, #tpu.memory_space<vmem>>, vector<8x32xbf16>
      tpu.vector_store %arg8[%c0_19, %c0_20], %51 {strides = array<i32>} : memref<16x32xbf16, #tpu.memory_space<vmem>>, vector<8x32xbf16>,
      %53 = vector.extract_strided_slice %50 {offsets = [1, 0], sizes = [7, 32], strides = [1, 1]} : vector<8x32xf32> to vector<7x32xf32>
      %c0_21 = arith.constant 0 : index
      %c0_22 = arith.constant 0 : index
      %54 = vector.load %arg7[%c0_21, %c0_22] : memref<8x32xf32, #tpu.memory_space<vmem>>, vector<7x32xf32>
      tpu.vector_store %arg7[%c0_21, %c0_22], %53 {strides = array<i32>} : memref<8x32xf32, #tpu.memory_space<vmem>>, vector<7x32xf32>,
      %c0_23 = arith.constant 0 : index
      %c0_24 = arith.constant 0 : index
      %55 = vector.load %arg6[%c0_23, %c0_24] : memref<8x32xf32, #tpu.memory_space<vmem>>, vector<8x32xf32>
      %56 = arith.mulf %55, %55 : vector<8x32xf32>
      %cst_25 = arith.constant dense<0.000000e+00> : vector<8xf32>
      %57 = vector.multi_reduction <add>, %56, %cst_25 [1] : vector<8x32xf32> to vector<8xf32>
      %58 = vector.shape_cast %57 : vector<8xf32> to vector<8x1xf32>
      %cst_26 = arith.constant 1.000000e-24 : f32
      %59 = vector.broadcast %cst_26 : f32 to vector<8x1xf32>
      %60 = arith.maximumf %58, %59 : vector<8x1xf32>
      %cst_27 = arith.constant 5.000000e-01 : f32
      %61 = vector.broadcast %cst_27 : f32 to vector<8x1xf32>
      %62 = arith.mulf %60, %61 : vector<8x1xf32>
      %63 = math.rsqrt %62 : vector<8x1xf32>
      %64 = vector.broadcast %63 : vector<8x1xf32> to vector<8x32xf32>
      %65 = arith.mulf %55, %64 : vector<8x32xf32>
      %66 = arith.truncf %65 : vector<8x32xf32> to vector<8x32xbf16>
      %c8 = arith.constant 8 : index
      %c0_28 = arith.constant 0 : index
      %67 = vector.load %arg8[%c8, %c0_28] : memref<16x32xbf16, #tpu.memory_space<vmem>>, vector<8x32xbf16>
      tpu.vector_store %arg8[%c8, %c0_28], %66 {strides = array<i32>} : memref<16x32xbf16, #tpu.memory_space<vmem>>, vector<8x32xbf16>,
      %68 = vector.extract_strided_slice %65 {offsets = [0, 0], sizes = [1, 32], strides = [1, 1]} : vector<8x32xf32> to vector<1x32xf32>
      %c7 = arith.constant 7 : index
      %c0_29 = arith.constant 0 : index
      %69 = vector.load %arg7[%c7, %c0_29] : memref<8x32xf32, #tpu.memory_space<vmem>>, vector<1x32xf32>
      tpu.vector_store %arg7[%c7, %c0_29], %68 {strides = array<i32>} : memref<8x32xf32, #tpu.memory_space<vmem>>, vector<1x32xf32>,
    } else {
    }
    %c8_i32 = arith.constant 8 : i32
    %3 = arith.muli %arg1, %c8_i32 : i32
    %4 = tpu.assume_multiple %3, 8 : i32
    %c8_i32_1 = arith.constant 8 : i32
    %5 = arith.muli %arg0, %c8_i32_1 : i32
    %6 = arith.addi %5, %4 : i32
    %7 = tpu.assume_multiple %6, 8 : i32
    %8 = arith.index_cast %7 : i32 to index
    %c0 = arith.constant 0 : index
    %9 = vector.load %arg8[%8, %c0] : memref<16x32xbf16, #tpu.memory_space<vmem>>, vector<8x32xbf16>
    %c0_2 = arith.constant 0 : index
    %c0_3 = arith.constant 0 : index
    %10 = vector.load %arg8[%c0_2, %c0_3] : memref<16x32xbf16, #tpu.memory_space<vmem>>, vector<16x32xbf16>
    %cst = arith.constant dense<0.000000e+00> : vector<8x16xf32>
    %11 = tpu.matmul %9, %10, %cst {dimension_numbers = #tpu.dot_dimension_numbers<[1], [1], [0], [0], [0, 0, 1, 0], [], []>} : vector<8x32xbf16>, vector<16x32xbf16>, vector<8x16xf32> -> vector<8x16xf32>
    %12 = tpu.iota {dimensions = array<i32: 1>} : vector<8x16xi32>
    %13 = tpu.iota {dimensions = array<i32: 0>} : vector<8x16xi32>
    %14 = vector.broadcast %7 : i32 to vector<8x16xi32>
    %15 = arith.addi %14, %13 : vector<8x16xi32>
    %16 = arith.cmpi eq, %12, %15 : vector<8x16xi32>
    %cst_4 = arith.constant 2.000000e+00 : f32
    %17 = vector.broadcast %cst_4 : f32 to vector<8x16xf32>
    %18 = arith.subf %11, %17 : vector<8x16xf32>
    %19 = math.exp %18 : vector<8x16xf32>
    %cst_5 = arith.constant 0.000000e+00 : f32
    %20 = vector.broadcast %cst_5 : f32 to vector<8x16xf32>
    %21 = arith.select %16, %20, %19 : vector<8x16xi1>, vector<8x16xf32>
    %cst_6 = arith.constant dense<0.000000e+00> : vector<8xf32>
    %22 = vector.multi_reduction <add>, %21, %cst_6 [1] : vector<8x16xf32> to vector<8xf32>
    %23 = vector.shape_cast %22 : vector<8xf32> to vector<8x1xf32>
    %24 = math.log %23 : vector<8x1xf32>
    %cst_7 = arith.constant 2.000000e+00 : f32
    %25 = vector.broadcast %cst_7 : f32 to vector<8x1xf32>
    %26 = arith.addf %24, %25 : vector<8x1xf32>
    %27 = arith.extf %9 : vector<8x32xbf16> to vector<8x32xf32>
    %c0_i32_8 = arith.constant 0 : i32
    %28 = arith.cmpi eq, %arg0, %c0_i32_8 : i32
    %29 = arith.index_cast %4 : i32 to index
    %c0_9 = arith.constant 0 : index
    %30 = vector.load %arg7[%29, %c0_9] : memref<8x32xf32, #tpu.memory_space<vmem>>, vector<8x32xf32>
    %31 = arith.index_cast %4 : i32 to index
    %c0_10 = arith.constant 0 : index
    %32 = vector.load %arg8[%31, %c0_10] : memref<16x32xbf16, #tpu.memory_space<vmem>>, vector<8x32xbf16>
    %33 = arith.extf %32 : vector<8x32xbf16> to vector<8x32xf32>
    %34 = arith.select %28, %30, %33 : vector<8x32xf32>
    %35 = arith.mulf %27, %34 : vector<8x32xf32>
    %cst_11 = arith.constant dense<0.000000e+00> : vector<8xf32>
    %36 = vector.multi_reduction <add>, %35, %cst_11 [1] : vector<8x32xf32> to vector<8xf32>
    %37 = vector.shape_cast %36 : vector<8xf32> to vector<8x1xf32>
    %38 = arith.subf %26, %37 : vector<8x1xf32>
    %c0_12 = arith.constant 0 : index
    %c0_13 = arith.constant 0 : index
    %39 = vector.load %arg4[%c0_12, %c0_13] : memref<8x1xf32, #tpu.memory_space<vmem>>, vector<8x1xf32>
    tpu.vector_store %arg4[%c0_12, %c0_13], %38 {strides = array<i32>} : memref<8x1xf32, #tpu.memory_space<vmem>>, vector<8x1xf32>,
    return
  }
  func.func @transform_2(%arg0: i32, %arg1: i32) -> (i32, i32) {
    %c1_i32 = arith.constant 1 : i32
    %0 = arith.muli %arg0, %c1_i32 : i32
    %1 = arith.addi %0, %arg1 : i32
    %c0_i32 = arith.constant 0 : i32
    %c0_i32_0 = arith.constant 0 : i32
    return %1, %c0_i32 : i32, i32
  }
}

</mosaic_0001>

<bundles_post_ra>
// kernel: tpu_custom_call.1
= control target key start
LH: loop header
LB: loop body
LE: loop exit
PB: predicated region body
PF: predicated region fallthrough
CT: control target
= control target key end

     0   :  { %s402_s9 = smov 0   ;;  %s404_s10 = smov 0   ;;  %s443_s0 = inlined_call_operand.hbm [shape: f32[8,32], index: 0, kind: input, shape index: {}]   ;;  %s444_s1 = inlined_call_operand.hbm [shape: f32[8,32], index: 1, kind: input, shape index: {}]   ;;  %s445_s2 = inlined_call_operand.vmem [shape: f32[16,1], index: 2, kind: output, shape index: {}]  }
   0x1 LB: > { %s21_s11 = sadd.s32 1, %s377_s9  ;;  %p277_p1 = scmp.ge.s32.totalorder %s381_s10, 2  ;;  %s381_s10 = sphi %s404_s10, %s12_s10   ;;  %s377_s9 = sphi %s402_s9, %s446_s9  }
   0x2   : > { %p23_p0 = scmp.ge.s32.totalorder %s21_s11, 2  ;;  %p58_p2 = scmp.lt.s32.totalorder (!%p277_p1), %s377_s9, 1 }
   0x3   : > { %49 = sbr.rel (%p277_p1) target bundleno = 593 (0x251), region = 12 }
   0x4   : > { %s448_s11 = smov (%p23_p0, %s21_s11), 0 }
   0x8   : > { %s59_s12 = scalar_select %p58_p2, %s377_s9, 1 }
   0xa   : > { %s278_s13 = sshll.u32 %s59_s12, 3 }
   0xb   : > { %s421_s16 = scalar_lea.vmem %s445_s2, %s278_s13 }
   0xc   : > { %s383_s17 = smov [#allocation2]  }
   0xd   : > { %s75_s18 = sshll.u32 %s383_s17, 4  ;;  %s76_s18 = int_to_ptr.vmem [resolvable:$true] %s75_s18 }
   0xe   : > { %s331_s19 = scalar_lea.vmem %s76_s18, 128  ;;  %p336_p4 = scmp.lt.s32.totalorder %s76_s18, %s76_s18 }
   0xf   : > { %p332_p3 = scmp.ne.s32.totalorder %s76_s18, %s331_s19  ;;  %p337_p5 = scmp.lt.s32.totalorder %s331_s19, %s331_s19 }
  0x11   : > { %p338_p6 = por %p337_p5, %p336_p4 }
  0x13   : > { %p339_p7 = pnand %p338_p6, %p332_p3 }
  0x15   : > { %342 = shalt.err (!%p339_p7)  }
  0x16   : > { %78 = dma.hbm_to_vmem [thread:$0]  %s443_s0, 128, %s76_s18, [#allocation6] }
  0x17   : > { %371 = dma.done.wait [#allocation6], 128 }
  0x18   : > { %372 = vsyncadd [#allocation6], 4294967168 }
  0x19   : > { %s384_s22 = smov [#allocation3]  }
  0x1a   : > { %s89_s23 = sshll.u32 %s384_s22, 4  ;;  %s90_s23 = int_to_ptr.vmem [resolvable:$true] %s89_s23 }
  0x1b   : > { %s351_s24 = scalar_lea.vmem %s90_s23, 128  ;;  %p356_p9 = scmp.lt.s32.totalorder %s90_s23, %s90_s23 }
  0x1c   : > { %p352_p8 = scmp.ne.s32.totalorder %s90_s23, %s351_s24  ;;  %p357_p10 = scmp.lt.s32.totalorder %s351_s24, %s351_s24 }
  0x1e   : > { %p358_p11 = por %p357_p10, %p356_p9 }
  0x20   : > { %p359_p12 = pnand %p358_p11, %p352_p8 }
  0x22   : > { %362 = shalt.err (!%p359_p12)  }
  0x23   : > { %92 = dma.hbm_to_vmem [thread:$0]  %s444_s1, 128, %s90_s23, [#allocation11] }
  0x24   : > { %373 = dma.done.wait [#allocation11], 128 }
  0x25   : > { %374 = vsyncadd [#allocation11], 4294967168  ;;  %v96_v0 = vld [vmem:[#allocation2] sm:$0xff]  ;;  %vm98_vm0 = vcmask 261120   ;;  %v111_v1 = vld [vmem:[#allocation3] sm:$0xff]  ;;  %v385_v6 = vmov 0.0   ;;  %v186_v27 = vlaneseq }
  0x26   : > { %v97_v2 = vmul.f32 %v96_v0, %v96_v0  ;;  %v112_v3 = vmul.f32 %v111_v1, %v111_v1  ;;  %288 = vmatprep.subr.bf16.mxu0 %v385_v6  ;;  %vm386_vm1 = vmmov 0   ;;  %vm109_vm2 = vcmask 261121   ;;  %s279_s27 = sshll.u32 %s377_s9, 3  ;;  %p205_p13 = scmp.eq.s32.totalorder %s377_s9, 0 }
  0x27   : > { %290 = vmatprep.mubr.msk.bf16.mxu0 %vm386_vm1, %v385_v6  ;;  %vm107_vm3 = vcmask 257024   ;;  %vm122_vm4 = vcmask 253952   ;;  %s127_s28 = sshra.s32 %s279_s27, 3  ;;  %v189_v29 = vshrl.u32 %v186_v27, 7  ;;  %v190_v30 = vstv %s279_s27 }
  0x28   : > { %v99_v4 = vsel %vm98_vm0, %v97_v2, 0.0  ;;  %v113_v5 = vsel %vm98_vm0, %v112_v3, 0.0  ;;  %s280_s29 = sshll.u32 %s127_s28, 2  ;;  %v187_v31 = vand.u32 127, %v186_v27  ;;  %vm197_vm7 = vcmask 130048  }
  0x29   : > { %100 = vadd.xlane.f32.xlu0 %v99_v4  ;;  %s130_s30 = scalar_lea.vmem [#allocation5], %s280_s29  ;;  %v191_v32 = vadd.s32 %v190_v30, %v189_v29  ;;  %vm223_vm8 = vcmask 7168  }
  0x2a   : > { %s214_s3 = scalar_select %p205_p13, 1, 0 }
  0x2b   : > { %vm192_vm5 = vcmp.eq.s32.totalorder %v187_v31, %v191_v32 }
  0x2c   : > { %v215_v34 = vstv %s214_s3 }
  0x2d   : > { %114 = vadd.xlane.f32.xlu0 %v113_v5  ;;  %vm216_vm6 = vcmp.eq.s32.totalorder %v215_v34, 1 }
  0xb2   : > { %v101_v7 = vpop.xlane.xlu0 %100 }
  0xb3   : > { %v102_v8 = vmax.f32 %v101_v7, 1e-24 }
  0xb5   : > { %v103_v9 = vmul.f32 0.5, %v102_v8 }
  0xb6   : > { %v115_v10 = vpop.xlane.xlu0 %114 }
  0xb7   : > { %315 = vrsqrt.f32 %v103_v9  ;;  %v116_v11 = vmax.f32 %v115_v10, 1e-24 }
  0xb9   : > { %v117_v12 = vmul.f32 0.5, %v116_v11 }
  0xbb   : > { %317 = vrsqrt.f32 %v117_v12 }
  0xc4   : > { %v316_v13 = vpop.eup %315 }
  0xc5   : > { %v105_v14 = vmul.f32 %v316_v13, %v96_v0 }
  0xc7   : > { %v106_v15 = vpack.c.bf16 %v105_v14, %v105_v14  ;;  %110 = vst.msk [vmem:[#allocation4 - $0x1] sm:$0xfe] %vm109_vm2, %v105_v14 }
  0xc8   : > { %v318_v16 = vpop.eup %317 }
  0xc9   : > { %108 = vst.msk [vmem:[#allocation5] sm:$0xf] %vm107_vm3, %v106_v15  ;;  %v119_v17 = vmul.f32 %v318_v16, %v111_v1 }
  0xcb   : > { %v120_v18 = vpack.c.bf16 %v119_v17, %v119_v17  ;;  %123 = vst.msk [vmem:[#allocation4 + $0x7] sm:$0x1] %vm122_vm4, %v119_v17 }
  0xcd   : > { %121 = vst.msk [vmem:[#allocation5 + $0x4] sm:$0xf] %vm107_vm3, %v120_v18 }
  0xd0   : > { %v212_v33 = vld [vmem:[#allocation5] sm:$0xf] }
  0xd1   : > { %v213_v35 = vunpack.c.l.bf16 %v212_v33 }
  0xd2   : > { %v207_v37 = vld [vmem:[#allocation4] sm:$0xff] }
  0xd3   : > { %v217_v40 = vsel %vm216_vm6, %v207_v37, %v213_v35 }
  0xd4   : > { %v314_v19 = vld [vmem:[#allocation5] sm:$0xff]   ;;  %v131_v21 = vld [vmem:[%s130_s30] sm:$0xf] }
  0xd5   : > { %v144_v20 = vsel %vm98_vm0, %v314_v19, 0  ;;  %v204_v36 = vunpack.c.l.bf16 %v131_v21 }
  0xd6   : > { %289 = vmatpush3.bf16.xpose.msra.mxu0 %v144_v20 }
  0xd7   : > { %v218_v42 = vmul.f32 %v217_v40, %v204_v36 }
  0xd9   : > { %v219_v43 = vsel %vm98_vm0, %v218_v42, 0.0 }
  0xdd   : > { %291 = vmatmul.mubr.msk.bf16.vlgmr.msra.gmra.mxu0 %vm98_vm0, %v131_v21 }
 0x19d   : > { %v180_v22 = vpop.f32.mrf.mxu0 }
 0x19e   : > { %v283_v23 = vadd.f32 -2.0, %v180_v22 }
 0x19f   : > { %v292_v24 = vpop.f32.mrf.mxu0 }
 0x1a0   : > { %v194_v25 = vmul.f32 1.442695, %v283_v23 }
 0x1a1   : > { %v183_v26 = vpop.f32.mrf.mxu0 }
 0x1a2   : > { %319 = vpow2.f32 %v194_v25 }
 0x1a3   : > { %v293_v28 = vpop.f32.mrf.mxu0 }
 0x1af   : > { %v320_v38 = vpop.eup %319 }
 0x1b0   : > { %v196_v39 = vsel %vm192_vm5, 0.0, %v320_v38 }
 0x1b1   : > { %v198_v41 = vsel %vm197_vm7, %v196_v39, 0.0 }
 0x1b2   : > { %199 = vadd.xlane.f32.xlu1 %v198_v41 }
 0x1b6   : > { %220 = vadd.xlane.f32.xlu1 %v219_v43 }
 0x23b   : > { %v200_v44 = vpop.xlane.xlu1 %199 }
 0x23c   : > { %321 = vlog2.f32 %v200_v44 }
 0x23f   : > { %v221_v48 = vpop.xlane.xlu1 %220 }
 0x249   : > { %v322_v45 = vpop.eup %321 }
 0x24a   : > { %v202_v46 = vmul.f32 0.6931472, %v322_v45 }
 0x24c   : > { %v203_v47 = vadd.f32 2.0, %v202_v46 }
 0x24e   : > { %v222_v49 = vsub.f32 %v203_v47, %v221_v48 }
 0x250   : > { %224 = vst.msk [vmem:[%s421_s16] sm:$0xff] %vm223_vm8, %v222_v49 }
 0x251 PF: > { %s12_s10 = sadd.s32 1, %s381_s10   ;;  %s446_s9 = smov %s448_s11 }
 0x252   : > { %p9_p0 = scmp.ge.s32.totalorder %s12_s10, 3  }
 0x254   :  { %11 = sbr.rel (!%p9_p0) target bundleno = 1 (0x1), region = 56 }

</bundles_post_ra>
